<compile_context>
chip_gen: v7x
topology: tpu7x:2x2x1
jax: 0.10.0
libtpu: 0.0.40
codegen_flags: <defaults>
</compile_context>

<pallas_src>
import functools

import jax
import jax.numpy as jnp
from jax import lax
from jax.experimental import pallas as pl
from jax.experimental.pallas import tpu as pltpu


def _sim_topk_kernel(q_ref, e_ref, idx_out_ref, vals_ref, inds_ref, *,
                     topk, d_tile, d_total):
    """Phase 1: streaming cosine-sim + running top-k over D tiles (one batch row)."""
    d = pl.program_id(1)

    @pl.when(d == 0)
    def _init():
        vals_ref[...] = jnp.full(vals_ref.shape, -jnp.inf, jnp.float32)
        inds_ref[...] = jnp.zeros(inds_ref.shape, jnp.int32)

    q = q_ref[0]                                   # (1, H)  pre-normalized query rep
    e = e_ref[0]                                   # (Dt, H) pubmed_doc_embeds tile

    # --- nn.CosineSimilarity(dim=2): dots and per-doc squared norms, both as MXU
    # contractions in the input dtype with f32 accumulation (no f32 tile temps).
    dots = lax.dot_general(q, e, (((1,), (1,)), ((), ())),
                           preferred_element_type=jnp.float32)            # (1, Dt)
    ones_row = jnp.ones((1, q.shape[1]), e.dtype)
    e_sq = lax.dot_general(ones_row, e * e, (((1,), (1,)), ((), ())),
                           preferred_element_type=jnp.float32)            # (1, Dt)
    eps = jnp.float32(1e-8)
    e_norm = jnp.maximum(jnp.sqrt(e_sq), eps)                             # (1, Dt)
    sim = dots / e_norm
    # np.nan_to_num(..., nan=-1.1); +/-inf clamping is unreachable (norms >= eps).
    sim = jnp.where(sim != sim, jnp.float32(-1.1), sim)

    # Mask columns past the true D (partial last tile would otherwise read garbage).
    # NOTE: must stay AFTER the NaN replacement so padded columns are exactly -inf.
    col = d * d_tile + lax.broadcasted_iota(jnp.int32, (1, d_tile), 1)    # (1, Dt)
    neg_inf = jnp.float32(-jnp.inf)
    sim = jnp.where(col < d_total, sim, neg_inf)

    # --- merge this tile into the running top-k (torch.topk over the full row) ---
    # Per extracted slot: one max + one index-min over the wide (1, Dt) tile (2 XLU
    # reductions, down from 3) plus two cheap (1, topk)-wide reductions.  Ties pick
    # the smallest doc index (running entries come from earlier columns, so they win).
    run_v = vals_ref[...]                                                 # (1, topk)
    run_i = inds_ref[...]
    tile_v = sim
    tile_i = col
    big = jnp.int32(2 ** 30)
    pos_k = lax.broadcasted_iota(jnp.int32, (1, topk), 1)
    new_v = jnp.full((1, topk), neg_inf, jnp.float32)
    new_i = jnp.zeros((1, topk), jnp.int32)
    for t in range(topk):                          # topk is small & static -> unrolled
        m_r = jnp.max(run_v, axis=1, keepdims=True)
        i_r = jnp.min(jnp.where(run_v == m_r, run_i, big), axis=1, keepdims=True)
        m_t = jnp.max(tile_v, axis=1, keepdims=True)
        i_t = jnp.min(jnp.where(tile_v == m_t, tile_i, big), axis=1, keepdims=True)
        take_run = m_r >= m_t                      # ties -> earlier (running) entry
        val = jnp.where(take_run, m_r, m_t)
        idx = jnp.where(take_run, i_r, i_t)
        slot = pos_k == t
        new_v = jnp.where(slot, val, new_v)
        new_i = jnp.where(slot, idx, new_i)
        # Consume the extracted entry (indices are unique among finite candidates).
        run_v = jnp.where(jnp.logical_and(take_run, run_i == i_r), neg_inf, run_v)
        tile_v = jnp.where(jnp.logical_and(jnp.logical_not(take_run), tile_i == i_t),
                           neg_inf, tile_v)
    vals_ref[...] = new_v
    inds_ref[...] = new_i

    @pl.when(d == pl.num_programs(1) - 1)
    def _finalize():
        idx_out_ref[0] = new_i


def _gather_predict_kernel(inds_ref, note_ref, enc_ref, w_note_ref, w_lit_ref, b_ref,
                           out_ref, sum_ref, *, topk):
    """Phase 2: BlockSpec-gathered top-k doc encodings, average, Linear(2H,L), row-max."""
    del inds_ref  # used only by the index_maps (scalar prefetch)
    j = pl.program_id(1)

    @pl.when(j == 0)
    def _init():
        sum_ref[...] = jnp.zeros_like(sum_ref)

    # enc_ref is the (1, 1, H) row doc_encodings[b, inds[b, j]] gathered by the
    # BlockSpec index_map; auto double-buffering prefetches (b, j+1) during this step.
    sum_ref[...] += enc_ref[0].astype(jnp.float32)                        # (1, H)

    @pl.when(j == topk - 1)
    def _finalize():
        # strategy == 'average': mean of the top-k doc encodings
        lit = sum_ref[...] * jnp.float32(1.0 / topk)                      # (1, H)
        note = note_ref[0].astype(jnp.float32)                            # (1, H)
        # final_rep = cat([note, lit], dim=1); logits = predictor(final_rep)
        # TODO(synk): on v7x, bf16 weights + batching Bt>=8 rows per step would fill
        # the MXU better; kept f32 / per-row here for exactness at these tiny sizes.
        logits = (jnp.dot(note, w_note_ref[...], preferred_element_type=jnp.float32)
                  + jnp.dot(lit, w_lit_ref[...], preferred_element_type=jnp.float32)
                  + b_ref[...])                                           # (1, Lp)
        # logits - max(logits) per example (padded cols carry -1e30 bias => never max)
        out_ref[0] = logits - jnp.max(logits, axis=1, keepdims=True)


def l2r_lit_aug_forward(query_rep, doc_embeds, note_rep, doc_encodings,
                        pred_weight, pred_bias, topk, d_tile=None):
    """Returns (retrieval_loss, final_output) like the PyTorch module (default config)."""
    B, H = query_rep.shape
    _, D, _ = doc_embeds.shape
    L = pred_bias.shape[0]
    assert 0 < topk <= D, "topk must be in (0, num_docs]"

    # Pre-normalize the query once (hoists the per-tile q-norm / sqrt / divide).
    # torch.nn.CosineSimilarity clamps ||q||*||e|| by eps jointly; clamping each norm
    # separately only differs for near-zero vectors.
    qf = query_rep.astype(jnp.float32)
    q_norm = jnp.maximum(jnp.sqrt(jnp.sum(qf * qf, axis=-1, keepdims=True)),
                         jnp.float32(1e-8))
    q_hat = (qf / q_norm).astype(doc_embeds.dtype)

    # D tile: whole D if small, otherwise a multiple-of-8 chunk of ~4 MiB.  The
    # Phase-1 scoped-VMEM limit is raised to cover double-buffering + the in-kernel
    # temps so the same default is safe on v5e/v6e/v7x (pass d_tile~8 MiB on v7x for
    # the last few % of HBM roofline).
    itemsize = jnp.dtype(doc_embeds.dtype).itemsize
    if d_tile is None:
        bytes_per_row = H * itemsize
        target = 4 * 1024 * 1024
        max_rows = max(8, target // bytes_per_row)
        d_tile = D if D <= max_rows else int(max_rows - max_rows % 8)
    d_tile = min(int(d_tile), D)
    assert d_tile == D or d_tile % 8 == 0
    num_d = pl.cdiv(D, d_tile)
    tile_bytes = d_tile * H * itemsize
    vmem_limit = int(min(max(4 * tile_bytes + (8 << 20), 16 << 20), 48 << 20))

    # ---- Phase 1: cosine sim + top-k indices (streams only doc_embeds) ----
    # TODO(synk): with B == 1 on v7x (2 TCs) the D axis should be the parallel axis
    # (per-core partial top-k merged in an epilogue); not needed for B >= 2.
    top_inds3 = pl.pallas_call(
        functools.partial(_sim_topk_kernel, topk=topk, d_tile=d_tile, d_total=D),
        out_shape=jax.ShapeDtypeStruct((B, 1, topk), jnp.int32),
        grid_spec=pltpu.PrefetchScalarGridSpec(
            num_scalar_prefetch=0,
            grid=(B, num_d),
            in_specs=[pl.BlockSpec((1, 1, H), lambda b, d: (b, 0, 0)),        # q_hat
                      pl.BlockSpec((1, d_tile, H), lambda b, d: (b, d, 0))],  # doc_embeds
            out_specs=pl.BlockSpec((1, 1, topk), lambda b, d: (b, 0, 0)),
            scratch_shapes=[pltpu.VMEM((1, topk), jnp.float32),
                            pltpu.VMEM((1, topk), jnp.int32)]),
        compiler_params=pltpu.CompilerParams(
            dimension_semantics=("parallel", "arbitrary"),
            vmem_limit_bytes=vmem_limit),
    )(q_hat.reshape(B, 1, H), doc_embeds)
    top_inds = top_inds3.reshape(B, topk)

    # ---- Phase 2: gather top-k doc encodings + 'average' + nn.Linear(2H, L) ----
    # Lane-pad the (tiny) label dim to 128 so the output store is lane-dense; padded
    # bias entries are -1e30 so padded logits never win the row max.  Sliced off below.
    Lp = ((L + 127) // 128) * 128
    w_t = jnp.transpose(pred_weight).astype(jnp.float32)                 # (2H, L)
    w_pad = jnp.zeros((2 * H, Lp), jnp.float32).at[:, :L].set(w_t)
    w_note, w_lit = w_pad[:H], w_pad[H:]
    b_pad = jnp.full((1, Lp), -1e30, jnp.float32).at[:, :L].set(
        pred_bias.astype(jnp.float32).reshape(1, L))

    out3 = pl.pallas_call(
        functools.partial(_gather_predict_kernel, topk=topk),
        out_shape=jax.ShapeDtypeStruct((B, 1, Lp), jnp.float32),
        grid_spec=pltpu.PrefetchScalarGridSpec(
            num_scalar_prefetch=1,                                        # top_inds -> SMEM
            grid=(B, topk),
            in_specs=[
                pl.BlockSpec((1, 1, H), lambda b, j, inds: (b, 0, 0)),    # note_rep
                # data-dependent gather: only top-k rows of doc_encodings leave HBM
                pl.BlockSpec((1, 1, H), lambda b, j, inds: (b, inds[b, j], 0)),
                pl.BlockSpec((H, Lp), lambda b, j, inds: (0, 0)),         # W, note half
                pl.BlockSpec((H, Lp), lambda b, j, inds: (0, 0)),         # W, lit half
                pl.BlockSpec((1, Lp), lambda b, j, inds: (0, 0)),         # bias
            ],
            out_specs=pl.BlockSpec((1, 1, Lp), lambda b, j, inds: (b, 0, 0)),
            scratch_shapes=[pltpu.VMEM((1, H), jnp.float32)]),
        compiler_params=pltpu.CompilerParams(
            dimension_semantics=("parallel", "arbitrary")),
    )(top_inds, note_rep.reshape(B, 1, H), doc_encodings, w_note, w_lit, b_pad)
    final_output = out3[:, 0, :L]

    # Default config: no query_loss / pubmed_doc_labels => retrieval_loss == 0.0
    # TODO(synk): 'weightaverage'/'softvote'/'weightvote' strategies and the optional
    # query_proj / rerank_model / retrieval-loss branches are not implemented here.
    retrieval_loss = jnp.float32(0.0)
    return retrieval_loss, final_output


def _reference(query_rep, doc_embeds, note_rep, doc_encodings, pred_weight, pred_bias, topk):
    eps = 1e-8
    qn = jnp.maximum(jnp.linalg.norm(query_rep, axis=-1, keepdims=True), eps)
    en = jnp.maximum(jnp.linalg.norm(doc_embeds, axis=-1), eps)
    sim = jnp.einsum('bh,bdh->bd', query_rep, doc_embeds) / (qn * en)
    sim = jnp.nan_to_num(sim, nan=-1.1)
    _, inds = lax.top_k(sim, topk)
    gathered = jnp.take_along_axis(doc_encodings, inds[:, :, None], axis=1)
    lit = jnp.mean(gathered, axis=1)
    final_rep = jnp.concatenate([note_rep, lit], axis=1)
    logits = final_rep @ pred_weight.T + pred_bias
    return logits - jnp.max(logits, axis=1, keepdims=True)


if __name__ == "__main__":
    B, D, H, L, TOPK = 2, 16, 32, 4, 3   # batch, num pubmed docs, hidden, num_labels, topk
    D_TILE = 8                           # force >1 doc tile so the streaming top-k merge runs

    key = jax.random.PRNGKey(0)
    k1, k2, k3, k4, k5, k6 = jax.random.split(key, 6)

    # Stand-ins for BERT pooled outputs / precomputed doc embeddings.
    query_rep = jax.random.normal(k1, (B, H), jnp.float32)
    doc_embeds = jax.random.normal(k2, (B, D, H), jnp.float32)
    note_rep = jax.random.normal(k3, (B, H), jnp.float32)
    doc_encodings = jax.random.normal(k4, (B, D, H), jnp.float32)

    # Deterministic predictor params: nn.Linear(2H, L)-style uniform init.
    bound = 1.0 / jnp.sqrt(2.0 * H)
    pred_weight = jax.random.uniform(k5, (L, 2 * H), jnp.float32, -bound, bound)
    pred_bias = jax.random.uniform(k6, (L,), jnp.float32, -bound, bound)

    retrieval_loss, final_output = l2r_lit_aug_forward(
        query_rep, doc_embeds, note_rep, doc_encodings, pred_weight, pred_bias,
        TOPK, d_tile=D_TILE)
    final_output = jax.block_until_ready(final_output)

    ref = _reference(query_rep, doc_embeds, note_rep, doc_encodings,
                     pred_weight, pred_bias, TOPK)
    assert final_output.shape == (B, L)
    assert jnp.allclose(final_output, ref, atol=1e-4, rtol=1e-4), (final_output, ref)
    assert float(retrieval_loss) == 0.0

    print("KERNEL_OK")
</pallas_src>

<mosaic_0001>
module attributes {stable_mosaic.version = 11 : i64} {
  func.func @_sim_topk_kernel(%arg0: i32, %arg1: i32, %arg2: memref<1x1x32xf32, #tpu.memory_space<vmem>>, %arg3: memref<1x8x32xf32, #tpu.memory_space<vmem>>, %arg4: memref<1x1x3xi32, #tpu.memory_space<vmem>>, %arg5: memref<1x3xf32, #tpu.memory_space<vmem>>, %arg6: memref<1x3xi32, #tpu.memory_space<vmem>>) attributes {dimension_semantics = [#tpu.dimension_semantics<parallel>, #tpu.dimension_semantics<arbitrary>], iteration_bounds = array<i64: 2, 2>, scalar_prefetch = 0 : i64, scratch_operands = 2 : i64, tpu.core_type = #tpu.core_type<tc>, window_params = [{transform_indices = @transform_0, window_bounds = array<i64: 1, 1, 32>}, {transform_indices = @transform_1, window_bounds = array<i64: 1, 8, 32>}, {transform_indices = @transform_2, window_bounds = array<i64: 1, 1, 3>}]} {
    %c0_i32 = arith.constant 0 : i32
    %0 = arith.cmpi eq, %arg1, %c0_i32 : i32
    %1 = arith.extui %0 : i1 to i32
    %c0_i32_0 = arith.constant 0 : i32
    %2 = arith.cmpi ne, %1, %c0_i32_0 : i32
    scf.if %2 {
      %cst_47 = arith.constant 0xFF800000 : f32
      %143 = vector.broadcast %cst_47 : f32 to vector<1x3xf32>
      %c0_48 = arith.constant 0 : index
      %c0_49 = arith.constant 0 : index
      %144 = vector.load %arg5[%c0_48, %c0_49] : memref<1x3xf32, #tpu.memory_space<vmem>>, vector<1x3xf32>
      tpu.vector_store %arg5[%c0_48, %c0_49], %143 {strides = array<i32>} : memref<1x3xf32, #tpu.memory_space<vmem>>, vector<1x3xf32>,
      %c0_i32_50 = arith.constant 0 : i32
      %145 = vector.broadcast %c0_i32_50 : i32 to vector<1x3xi32>
      %c0_51 = arith.constant 0 : index
      %c0_52 = arith.constant 0 : index
      %146 = vector.load %arg6[%c0_51, %c0_52] : memref<1x3xi32, #tpu.memory_space<vmem>>, vector<1x3xi32>
      tpu.vector_store %arg6[%c0_51, %c0_52], %145 {strides = array<i32>} : memref<1x3xi32, #tpu.memory_space<vmem>>, vector<1x3xi32>,
    } else {
    }
    %c0 = arith.constant 0 : index
    %c0_1 = arith.constant 0 : index
    %c0_2 = arith.constant 0 : index
    %3 = vector.load %arg2[%c0, %c0_1, %c0_2] : memref<1x1x32xf32, #tpu.memory_space<vmem>>, vector<1x1x32xf32>
    %4 = vector.shape_cast %3 : vector<1x1x32xf32> to vector<1x32xf32>
    %c0_3 = arith.constant 0 : index
    %c0_4 = arith.constant 0 : index
    %c0_5 = arith.constant 0 : index
    %5 = vector.load %arg3[%c0_3, %c0_4, %c0_5] : memref<1x8x32xf32, #tpu.memory_space<vmem>>, vector<1x8x32xf32>
    %6 = vector.shape_cast %5 : vector<1x8x32xf32> to vector<8x32xf32>
    %cst = arith.constant dense<0.000000e+00> : vector<1x8xf32>
    %7 = tpu.matmul %4, %6, %cst {dimension_numbers = #tpu.dot_dimension_numbers<[1], [1], [0], [0], [0, 0, 1, 0], [], []>} : vector<1x32xf32>, vector<8x32xf32>, vector<1x8xf32> -> vector<1x8xf32>
    %cst_6 = arith.constant 1.000000e+00 : f32
    %8 = vector.broadcast %cst_6 : f32 to vector<1x32xf32>
    %9 = arith.mulf %6, %6 : vector<8x32xf32>
    %cst_7 = arith.constant dense<0.000000e+00> : vector<1x8xf32>
    %10 = tpu.matmul %8, %9, %cst_7 {dimension_numbers = #tpu.dot_dimension_numbers<[1], [1], [0], [0], [0, 0, 1, 0], [], []>} : vector<1x32xf32>, vector<8x32xf32>, vector<1x8xf32> -> vector<1x8xf32>
    %11 = math.sqrt %10 : vector<1x8xf32>
    %cst_8 = arith.constant 9.99999993E-9 : f32
    %12 = vector.broadcast %cst_8 : f32 to vector<1x8xf32>
    %13 = arith.maximumf %11, %12 : vector<1x8xf32>
    %14 = arith.divf %7, %13 : vector<1x8xf32>
    %15 = arith.cmpf one, %14, %14 : vector<1x8xf32>
    %cst_9 = arith.constant -1.100000e+00 : f32
    %16 = vector.broadcast %cst_9 : f32 to vector<1x8xf32>
    %17 = arith.select %15, %16, %14 : vector<1x8xi1>, vector<1x8xf32>
    %c8_i32 = arith.constant 8 : i32
    %18 = arith.muli %arg1, %c8_i32 : i32
    %19 = tpu.iota {dimensions = array<i32: 1>} : vector<1x8xi32>
    %20 = vector.broadcast %18 : i32 to vector<1x8xi32>
    %21 = arith.addi %20, %19 : vector<1x8xi32>
    %c16_i32 = arith.constant 16 : i32
    %22 = vector.broadcast %c16_i32 : i32 to vector<1x8xi32>
    %23 = arith.cmpi slt, %21, %22 : vector<1x8xi32>
    %cst_10 = arith.constant 0xFF800000 : f32
    %24 = vector.broadcast %cst_10 : f32 to vector<1x8xf32>
    %25 = arith.select %23, %17, %24 : vector<1x8xi1>, vector<1x8xf32>
    %c0_11 = arith.constant 0 : index
    %c0_12 = arith.constant 0 : index
    %26 = vector.load %arg5[%c0_11, %c0_12] : memref<1x3xf32, #tpu.memory_space<vmem>>, vector<1x3xf32>
    %c0_13 = arith.constant 0 : index
    %c0_14 = arith.constant 0 : index
    %27 = vector.load %arg6[%c0_13, %c0_14] : memref<1x3xi32, #tpu.memory_space<vmem>>, vector<1x3xi32>
    %28 = tpu.iota {dimensions = array<i32: 1>} : vector<1x3xi32>
    %cst_15 = arith.constant 0xFF800000 : f32
    %29 = vector.broadcast %cst_15 : f32 to vector<1x3xf32>
    %c0_i32_16 = arith.constant 0 : i32
    %30 = vector.broadcast %c0_i32_16 : i32 to vector<1x3xi32>
    %cst_17 = arith.constant dense<0xFF800000> : vector<1xf32>
    %31 = vector.multi_reduction <maximumf>, %26, %cst_17 [1] : vector<1x3xf32> to vector<1xf32>
    %32 = vector.shape_cast %31 : vector<1xf32> to vector<1x1xf32>
    %33 = vector.broadcast %32 : vector<1x1xf32> to vector<1x3xf32>
    %34 = arith.cmpf oeq, %26, %33 : vector<1x3xf32>
    %c1073741824_i32 = arith.constant 1073741824 : i32
    %35 = vector.broadcast %c1073741824_i32 : i32 to vector<1x3xi32>
    %36 = arith.select %34, %27, %35 : vector<1x3xi1>, vector<1x3xi32>
    %cst_18 = arith.constant dense<2147483647> : vector<1xi32>
    %37 = vector.multi_reduction <minsi>, %36, %cst_18 [1] : vector<1x3xi32> to vector<1xi32>
    %38 = vector.shape_cast %37 : vector<1xi32> to vector<1x1xi32>
    %cst_19 = arith.constant dense<0xFF800000> : vector<1xf32>
    %39 = vector.multi_reduction <maximumf>, %25, %cst_19 [1] : vector<1x8xf32> to vector<1xf32>
    %40 = vector.shape_cast %39 : vector<1xf32> to vector<1x1xf32>
    %41 = vector.broadcast %40 : vector<1x1xf32> to vector<1x8xf32>
    %42 = arith.cmpf oeq, %25, %41 : vector<1x8xf32>
    %c1073741824_i32_20 = arith.constant 1073741824 : i32
    %43 = vector.broadcast %c1073741824_i32_20 : i32 to vector<1x8xi32>
    %44 = arith.select %42, %21, %43 : vector<1x8xi1>, vector<1x8xi32>
    %cst_21 = arith.constant dense<2147483647> : vector<1xi32>
    %45 = vector.multi_reduction <minsi>, %44, %cst_21 [1] : vector<1x8xi32> to vector<1xi32>
    %46 = vector.shape_cast %45 : vector<1xi32> to vector<1x1xi32>
    %47 = arith.cmpf oge, %32, %40 : vector<1x1xf32>
    %48 = arith.select %47, %32, %40 : vector<1x1xi1>, vector<1x1xf32>
    %49 = arith.select %47, %38, %46 : vector<1x1xi1>, vector<1x1xi32>
    %c0_i32_22 = arith.constant 0 : i32
    %50 = vector.broadcast %c0_i32_22 : i32 to vector<1x3xi32>
    %51 = arith.cmpi eq, %28, %50 : vector<1x3xi32>
    %52 = vector.shape_cast %48 : vector<1x1xf32> to vector<1x1xf32>
    %53 = vector.broadcast %52 : vector<1x1xf32> to vector<1x3xf32>
    %54 = arith.select %51, %53, %29 : vector<1x3xi1>, vector<1x3xf32>
    %55 = vector.shape_cast %49 : vector<1x1xi32> to vector<1x1xi32>
    %56 = vector.broadcast %55 : vector<1x1xi32> to vector<1x3xi32>
    %57 = arith.select %51, %56, %30 : vector<1x3xi1>, vector<1x3xi32>
    %58 = vector.broadcast %38 : vector<1x1xi32> to vector<1x3xi32>
    %59 = arith.cmpi eq, %27, %58 : vector<1x3xi32>
    %60 = vector.broadcast %47 : vector<1x1xi1> to vector<1x3xi1>
    %61 = arith.andi %60, %59 : vector<1x3xi1>
    %cst_23 = arith.constant 0xFF800000 : f32
    %62 = vector.broadcast %cst_23 : f32 to vector<1x3xf32>
    %63 = arith.select %61, %62, %26 : vector<1x3xi1>, vector<1x3xf32>
    %cst_24 = arith.constant dense<true> : vector<1x1xi1>
    %64 = arith.xori %47, %cst_24 : vector<1x1xi1>
    %65 = vector.broadcast %46 : vector<1x1xi32> to vector<1x8xi32>
    %66 = arith.cmpi eq, %21, %65 : vector<1x8xi32>
    %67 = vector.broadcast %64 : vector<1x1xi1> to vector<1x8xi1>
    %68 = arith.andi %67, %66 : vector<1x8xi1>
    %cst_25 = arith.constant 0xFF800000 : f32
    %69 = vector.broadcast %cst_25 : f32 to vector<1x8xf32>
    %70 = arith.select %68, %69, %25 : vector<1x8xi1>, vector<1x8xf32>
    %cst_26 = arith.constant dense<0xFF800000> : vector<1xf32>
    %71 = vector.multi_reduction <maximumf>, %63, %cst_26 [1] : vector<1x3xf32> to vector<1xf32>
    %72 = vector.shape_cast %71 : vector<1xf32> to vector<1x1xf32>
    %73 = vector.broadcast %72 : vector<1x1xf32> to vector<1x3xf32>
    %74 = arith.cmpf oeq, %63, %73 : vector<1x3xf32>
    %c1073741824_i32_27 = arith.constant 1073741824 : i32
    %75 = vector.broadcast %c1073741824_i32_27 : i32 to vector<1x3xi32>
    %76 = arith.select %74, %27, %75 : vector<1x3xi1>, vector<1x3xi32>
    %cst_28 = arith.constant dense<2147483647> : vector<1xi32>
    %77 = vector.multi_reduction <minsi>, %76, %cst_28 [1] : vector<1x3xi32> to vector<1xi32>
    %78 = vector.shape_cast %77 : vector<1xi32> to vector<1x1xi32>
    %cst_29 = arith.constant dense<0xFF800000> : vector<1xf32>
    %79 = vector.multi_reduction <maximumf>, %70, %cst_29 [1] : vector<1x8xf32> to vector<1xf32>
    %80 = vector.shape_cast %79 : vector<1xf32> to vector<1x1xf32>
    %81 = vector.broadcast %80 : vector<1x1xf32> to vector<1x8xf32>
    %82 = arith.cmpf oeq, %70, %81 : vector<1x8xf32>
    %c1073741824_i32_30 = arith.constant 1073741824 : i32
    %83 = vector.broadcast %c1073741824_i32_30 : i32 to vector<1x8xi32>
    %84 = arith.select %82, %21, %83 : vector<1x8xi1>, vector<1x8xi32>
    %cst_31 = arith.constant dense<2147483647> : vector<1xi32>
    %85 = vector.multi_reduction <minsi>, %84, %cst_31 [1] : vector<1x8xi32> to vector<1xi32>
    %86 = vector.shape_cast %85 : vector<1xi32> to vector<1x1xi32>
    %87 = arith.cmpf oge, %72, %80 : vector<1x1xf32>
    %88 = arith.select %87, %72, %80 : vector<1x1xi1>, vector<1x1xf32>
    %89 = arith.select %87, %78, %86 : vector<1x1xi1>, vector<1x1xi32>
    %c1_i32 = arith.constant 1 : i32
    %90 = vector.broadcast %c1_i32 : i32 to vector<1x3xi32>
    %91 = arith.cmpi eq, %28, %90 : vector<1x3xi32>
    %92 = vector.shape_cast %88 : vector<1x1xf32> to vector<1x1xf32>
    %93 = vector.broadcast %92 : vector<1x1xf32> to vector<1x3xf32>
    %94 = arith.select %91, %93, %54 : vector<1x3xi1>, vector<1x3xf32>
    %95 = vector.shape_cast %89 : vector<1x1xi32> to vector<1x1xi32>
    %96 = vector.broadcast %95 : vector<1x1xi32> to vector<1x3xi32>
    %97 = arith.select %91, %96, %57 : vector<1x3xi1>, vector<1x3xi32>
    %98 = vector.broadcast %78 : vector<1x1xi32> to vector<1x3xi32>
    %99 = arith.cmpi eq, %27, %98 : vector<1x3xi32>
    %100 = vector.broadcast %87 : vector<1x1xi1> to vector<1x3xi1>
    %101 = arith.andi %100, %99 : vector<1x3xi1>
    %cst_32 = arith.constant 0xFF800000 : f32
    %102 = vector.broadcast %cst_32 : f32 to vector<1x3xf32>
    %103 = arith.select %101, %102, %63 : vector<1x3xi1>, vector<1x3xf32>
    %cst_33 = arith.constant dense<true> : vector<1x1xi1>
    %104 = arith.xori %87, %cst_33 : vector<1x1xi1>
    %105 = vector.broadcast %86 : vector<1x1xi32> to vector<1x8xi32>
    %106 = arith.cmpi eq, %21, %105 : vector<1x8xi32>
    %107 = vector.broadcast %104 : vector<1x1xi1> to vector<1x8xi1>
    %108 = arith.andi %107, %106 : vector<1x8xi1>
    %cst_34 = arith.constant 0xFF800000 : f32
    %109 = vector.broadcast %cst_34 : f32 to vector<1x8xf32>
    %110 = arith.select %108, %109, %70 : vector<1x8xi1>, vector<1x8xf32>
    %cst_35 = arith.constant dense<0xFF800000> : vector<1xf32>
    %111 = vector.multi_reduction <maximumf>, %103, %cst_35 [1] : vector<1x3xf32> to vector<1xf32>
    %112 = vector.shape_cast %111 : vector<1xf32> to vector<1x1xf32>
    %113 = vector.broadcast %112 : vector<1x1xf32> to vector<1x3xf32>
    %114 = arith.cmpf oeq, %103, %113 : vector<1x3xf32>
    %c1073741824_i32_36 = arith.constant 1073741824 : i32
    %115 = vector.broadcast %c1073741824_i32_36 : i32 to vector<1x3xi32>
    %116 = arith.select %114, %27, %115 : vector<1x3xi1>, vector<1x3xi32>
    %cst_37 = arith.constant dense<2147483647> : vector<1xi32>
    %117 = vector.multi_reduction <minsi>, %116, %cst_37 [1] : vector<1x3xi32> to vector<1xi32>
    %118 = vector.shape_cast %117 : vector<1xi32> to vector<1x1xi32>
    %cst_38 = arith.constant dense<0xFF800000> : vector<1xf32>
    %119 = vector.multi_reduction <maximumf>, %110, %cst_38 [1] : vector<1x8xf32> to vector<1xf32>
    %120 = vector.shape_cast %119 : vector<1xf32> to vector<1x1xf32>
    %121 = vector.broadcast %120 : vector<1x1xf32> to vector<1x8xf32>
    %122 = arith.cmpf oeq, %110, %121 : vector<1x8xf32>
    %c1073741824_i32_39 = arith.constant 1073741824 : i32
    %123 = vector.broadcast %c1073741824_i32_39 : i32 to vector<1x8xi32>
    %124 = arith.select %122, %21, %123 : vector<1x8xi1>, vector<1x8xi32>
    %cst_40 = arith.constant dense<2147483647> : vector<1xi32>
    %125 = vector.multi_reduction <minsi>, %124, %cst_40 [1] : vector<1x8xi32> to vector<1xi32>
    %126 = vector.shape_cast %125 : vector<1xi32> to vector<1x1xi32>
    %127 = arith.cmpf oge, %112, %120 : vector<1x1xf32>
    %128 = arith.select %127, %112, %120 : vector<1x1xi1>, vector<1x1xf32>
    %129 = arith.select %127, %118, %126 : vector<1x1xi1>, vector<1x1xi32>
    %c2_i32 = arith.constant 2 : i32
    %130 = vector.broadcast %c2_i32 : i32 to vector<1x3xi32>
    %131 = arith.cmpi eq, %28, %130 : vector<1x3xi32>
    %132 = vector.shape_cast %128 : vector<1x1xf32> to vector<1x1xf32>
    %133 = vector.broadcast %132 : vector<1x1xf32> to vector<1x3xf32>
    %134 = arith.select %131, %133, %94 : vector<1x3xi1>, vector<1x3xf32>
    %135 = vector.shape_cast %129 : vector<1x1xi32> to vector<1x1xi32>
    %136 = vector.broadcast %135 : vector<1x1xi32> to vector<1x3xi32>
    %137 = arith.select %131, %136, %97 : vector<1x3xi1>, vector<1x3xi32>
    %c0_41 = arith.constant 0 : index
    %c0_42 = arith.constant 0 : index
    %138 = vector.load %arg5[%c0_41, %c0_42] : memref<1x3xf32, #tpu.memory_space<vmem>>, vector<1x3xf32>
    tpu.vector_store %arg5[%c0_41, %c0_42], %134 {strides = array<i32>} : memref<1x3xf32, #tpu.memory_space<vmem>>, vector<1x3xf32>,
    %c0_43 = arith.constant 0 : index
    %c0_44 = arith.constant 0 : index
    %139 = vector.load %arg6[%c0_43, %c0_44] : memref<1x3xi32, #tpu.memory_space<vmem>>, vector<1x3xi32>
    tpu.vector_store %arg6[%c0_43, %c0_44], %137 {strides = array<i32>} : memref<1x3xi32, #tpu.memory_space<vmem>>, vector<1x3xi32>,
    %c1_i32_45 = arith.constant 1 : i32
    %140 = arith.cmpi eq, %arg1, %c1_i32_45 : i32
    %141 = arith.extui %140 : i1 to i32
    %c0_i32_46 = arith.constant 0 : i32
    %142 = arith.cmpi ne, %141, %c0_i32_46 : i32
    scf.if %142 {
      %c0_47 = arith.constant 0 : index
      %c0_48 = arith.constant 0 : index
      %c0_49 = arith.constant 0 : index
      %143 = vector.load %arg4[%c0_47, %c0_48, %c0_49] : memref<1x1x3xi32, #tpu.memory_space<vmem>>, vector<1x1x3xi32>
      %144 = vector.shape_cast %143 : vector<1x1x3xi32> to vector<1x3xi32>
      %145 = vector.shape_cast %137 : vector<1x3xi32> to vector<1x1x3xi32>
      tpu.vector_store %arg4[%c0_47, %c0_48, %c0_49], %145 {strides = array<i32>} : memref<1x1x3xi32, #tpu.memory_space<vmem>>, vector<1x1x3xi32>,
    } else {
    }
    return
  }
  func.func @transform_0(%arg0: i32, %arg1: i32) -> (i32, i32, i32) {
    %c0_i32 = arith.constant 0 : i32
    %c0_i32_0 = arith.constant 0 : i32
    %c0_i32_1 = arith.constant 0 : i32
    return %arg0, %c0_i32, %c0_i32_0 : i32, i32, i32
  }
  func.func @transform_1(%arg0: i32, %arg1: i32) -> (i32, i32, i32) {
    %c0_i32 = arith.constant 0 : i32
    %c0_i32_0 = arith.constant 0 : i32
    return %arg0, %arg1, %c0_i32 : i32, i32, i32
  }
  func.func @transform_2(%arg0: i32, %arg1: i32) -> (i32, i32, i32) {
    %c0_i32 = arith.constant 0 : i32
    %c0_i32_0 = arith.constant 0 : i32
    %c0_i32_1 = arith.constant 0 : i32
    return %arg0, %c0_i32, %c0_i32_0 : i32, i32, i32
  }
}

</mosaic_0001>

<bundles_post_ra>
// kernel: tpu_custom_call.1
= control target key start
LH: loop header
LB: loop body
LE: loop exit
PB: predicated region body
PF: predicated region fallthrough
CT: control target
= control target key end

     0   :  { %s1439_s0 = inlined_call_operand.hbm [shape: f32[2,1,32], index: 0, kind: input, shape index: {}]   ;;  %s1440_s1 = inlined_call_operand.hbm [shape: f32[2,16,32], index: 1, kind: input, shape index: {}]   ;;  %s1441_s2 = inlined_call_operand.hbm [shape: s32[2,1,3], index: 2, kind: output, shape index: {}]  }
   0x1   :  { %1453 = sst [smem:[#allocation18_spill]] %s1439_s0 }
   0x2   :  { %1454 = sst [smem:[#allocation19_spill]] %s1441_s2 }
   0x3   :  { %7 = vsyncpa [#allocation5], 0 }
   0x4   :  { %9 = vsyncpa [#allocation5 + $0x1], 0 }
   0x5   :  { %10 = vsyncpa [#allocation8], 0 }
   0x6   :  { %12 = vsyncpa [#allocation8 + $0x1], 0 }
   0x7   :  { %13 = vsyncpa [#allocation6], 0 }
   0x8   :  { %15 = vsyncpa [#allocation6 + $0x1], 0  ;;  %s1036_s9 = smov 0   ;;  %s1038_s10 = smov 0  }
   0x9   :  { %s1040_s11 = smov 0   ;;  %s1042_s12 = smov 0  }
   0xa   :  { %s1044_s13 = smov 0   ;;  %s1046_s14 = smov 0  }
   0xb   :  { %s1048_s15 = smov 0   ;;  %s1050_s16 = smov 0  }
   0xc   :  { %s1052_s17 = smov 0   ;;  %s1054_s18 = smov 0  }
   0xd   :  { %s1056_s19 = smov 0  }
   0xe LB: > { %1455 = sst [smem:[#allocation13_spill]] %s982_s12  ;;  %s673_s20 = sadd.s32 4294967295, %s1010_s19   ;;  %s1010_s19 = sphi %s1056_s19, %s21_s19   ;;  %s1006_s18 = sphi %s1054_s18, %s1494_s18   ;;  %s1002_s17 = sphi %s1052_s17, %s1493_s17   ;;  %s998_s16 = sphi %s1050_s16, %s1492_s16   ;;  %s994_s15 = sphi %s1048_s15, %s1491_s15   ;;  %s990_s14 = sphi %s1046_s14, %s1490_s14   ;;  %s986_s13 = sphi %s1044_s13, %s1489_s13   ;;  %s982_s12 = sphi %s1042_s12, %s1488_s12   ;;  %s978_s11 = sphi %s1040_s11, %s1487_s11   ;;  %s974_s10 = sphi %s1038_s10, %s1486_s10   ;;  %s970_s9 = sphi %s1036_s9, %s1485_s9  }
   0xf   : > { %1456 = sst [smem:[#allocation14_spill]] %s998_s16  ;;  %s674_s21 = sadd.s32 4294967294, %s1010_s19  }
  0x10   : > { %s40_s22 = sadd.s32 1, %s990_s14  ;;  %p47_p0 = scmp.ne.s32.totalorder %s990_s14, %s986_s13 }
  0x11   : > { %p1443_p1 = scmp.eq.s32.totalorder %s1010_s19, 0  ;;  %p53_p2 = scmp.ne.s32.totalorder %s986_s13, %s982_s12 }
  0x12   : > { %p1099_p3 = scmp.eq.s32.totalorder %s673_s20, 0  ;;  %p105_p4 = scmp.eq.s32.totalorder %s673_s20, 3 }
  0x13   : > { %p49_p5 = por %p1443_p1, %p47_p0  ;;  %p111_p6 = scmp.eq.s32.totalorder %s674_s21, 3 }
  0x14   : > { %p1107_p7 = por %p1099_p3, %p53_p2  ;;  %p1111_p8 = por %p105_p4, %p47_p0 }
  0x15   : > { %p1115_p9 = por %p111_p6, %p53_p2  ;;  %p1442_p10 = scmp.lt.s32.totalorder %s1010_s19, 4 }
  0x16   : > { %s1458_s24 = scalar_select %p1107_p7, 1, 0 }
  0x17   : > { %s1459_s25 = scalar_select %p1111_p8, 1, 0 }
  0x18   : > { %s1461_s26 = scalar_select %p1115_p9, 1, 0 }
  0x19   : > { %1460 = sst [smem:[#allocation15_spill]] %s1459_s25  ;;  %s131_s27 = sand.u32 1, %s990_s14  }
  0x1a   : > { %1462 = sst [smem:[#allocation16_spill]] %s1461_s26  ;;  %s677_s28 = sshll.u32 %s1006_s18, 4 }
  0x1b   : > { %s134_s29 = scalar_lea.vmem [#allocation4], %s131_s27  ;;  %s1463_s0 = sld [smem:[#allocation18_spill]] }
  0x1c   : > { %s141_s30 = sshll.u32 %s134_s29, 4  ;;  %p1131_p11 = pnand %p1442_p10, %p49_p5  ;;  %s1127_s30 = int_to_ptr.vmem [resolvable:$true] %s141_s30 }
  0x1d   : > { %s132_s7 = scalar_lea.sflag [#allocation5], %s131_s27 }
  0x1e   : > { %p826_p2 = pneg %p1131_p11 }
  0x21   : > { %s1125_s5 = scalar_lea.hbm %s1463_s0, %s677_s28  ;;  %s829_s28 = scalar_lea.hbm %s1463_s0, 32 }
  0x22   : > { %s824_s8 = scalar_lea.hbm %s1125_s5, 16  ;;  %p830_p5 = scmp.lt.u32.totalorder %s1125_s5, %s1463_s0 }
  0x23   : > { %p825_p0 = scmp.ne.s32.totalorder %s1125_s5, %s824_s8  ;;  %p831_p10 = scmp.lt.u32.totalorder %s829_s28, %s824_s8 }
  0x24   : > { %p833_p12 = scmp.lt.u32.totalorder %s824_s8, %s1125_s5 }
  0x25   : > { %p827_p4 = pnand %p826_p2, %p825_p0  ;;  %p832_p1 = por %p831_p10, %p830_p5 }
  0x27   : > { %p828_p6 = pneg %p827_p4  ;;  %p834_p13 = por %p833_p12, %p832_p1 }
  0x29   : > { %p835_p9 = pnand %p834_p13, %p828_p6 }
  0x2b   : > { %838 = shalt.err (!%p835_p9)
}
  0x2c   : > { %s839_s27 = scalar_lea.vmem %s1127_s30, 16  ;;  %s1012_s4 = smov [#allocation4]  }
  0x2d   : > { %p840_p0 = scmp.ne.s32.totalorder %s1127_s30, %s839_s27  ;;  %s844_s20 = sshll.u32 %s1012_s4, 4  ;;  %s845_s20 = int_to_ptr.vmem [resolvable:$false] %s844_s20 }
  0x2e   : > { %s846_s21 = scalar_lea.vmem %s845_s20, 32  ;;  %p847_p7 = scmp.lt.s32.totalorder %s1127_s30, %s845_s20 }
  0x2f   : > { %p842_p4 = pnand %p840_p0, %p826_p2  ;;  %p848_p10 = scmp.lt.s32.totalorder %s846_s21, %s839_s27 }
  0x31   : > { %p843_p8 = pneg %p842_p4  ;;  %p849_p5 = por %p848_p10, %p847_p7 }
  0x33   : > { %p850_p1 = pnand %p849_p5, %p843_p8 }
  0x35   : > { %853 = shalt.err (!%p850_p1)
}
  0x36   : > { %716 = dma.hbm_to_vmem [thread:$0]  (!%p1131_p11), %s1125_s5, 16, %s1127_s30, %s132_s7  }
  0x37   : > { %p1465_p7 = scmp.lt.s32.totalorder %s1010_s19, 5  ;;  %p1466_p8 = scmp.ge.s32.totalorder %s1010_s19, 1 }
  0x38   : > { %s30_s8 = sadd.s32 1, %s1002_s17  ;;  %s33_s28 = sadd.s32 1, %s1006_s18 }
  0x39   : > { %p1166_p9 = pnand %p1466_p8, %p1465_p7  ;;  %p31_p12 = scmp.ge.s32.totalorder %s30_s8, 2 }
  0x3a   : > { %s68_s29 = sadd.s32 1, %s978_s11  ;;  %p75_p13 = scmp.ne.s32.totalorder %s978_s11, %s974_s10 }
  0x3b   : > { %s1496_s8 = smov (%p31_p12, %s30_s8), 0  ;;  %s1498_s28 = smov (!%p31_p12, %s33_s28), %s1006_s18 }
  0x3c   : > { %1468 = sst [smem:[#allocation17_spill]] %s1496_s8  ;;  %s64_s30 = ssub.s32 %s1002_s17, %s1496_s8 }
  0x3d   : > { %p1469_p11 = scmp.eq.s32.totalorder %s1010_s19, 0  ;;  %p35_p6 = scmp.ge.s32.totalorder %s1498_s28, 2 }
  0x3e   : > { %p81_p0 = scmp.ne.s32.totalorder %s974_s10, %s970_s9  ;;  %s148_s7 = sand.u32 1, %s978_s11  }
  0x3f   : > { %p1182_p2 = por %p75_p13, %p1469_p11  ;;  %s679_s3 = sshll.u32 %s1006_s18, 1 }
  0x40   : > { %s1500_s28 = smov (%p35_p6, %s1498_s28), 0  ;;  %p1194_p4 = por %p81_p0, %p1099_p3 }
  0x41   : > { %s37_s4 = ssub.s32 %s1006_s18, %s1500_s28  ;;  %s678_s20 = sshll.u32 %s148_s7, 3 }
  0x42   : > { %s1471_s27 = scalar_select %p1194_p4, 1, 0 }
  0x43   : > { %p38_p10 = scmp.eq.s32.totalorder %s37_s4, 0  ;;  %s65_s21 = sor.u32 %s64_s30, %s37_s4 }
  0x44   : > { %p66_p5 = scmp.eq.s32.totalorder %s65_s21, 0  ;;  %s157_s8 = sadd.s32 %s1002_s17, %s679_s3 }
  0x45   : > { %s1203_s0 = scalar_select %p38_p10, %s990_s14, %s40_s22  }
  0x46   : > { %s1206_s9 = scalar_select %p66_p5, %s978_s11, %s68_s29  }
  0x47   : > { %s152_s26 = scalar_lea.vmem [#allocation7], %s678_s20  ;;  %s680_s2 = sshll.u32 %s157_s8, 7 }
  0x48   : > { %s161_s12 = sshll.u32 %s152_s26, 4  ;;  %s1214_s16 = scalar_lea.hbm %s1440_s1, %s680_s2  ;;  %s1209_s12 = int_to_ptr.vmem [resolvable:$true] %s161_s12 }
  0x49   : > { %p1472_p3 = scmp.lt.s32.totalorder %s1010_s19, 4  ;;  %s149_s26 = scalar_lea.sflag [#allocation8], %s148_s7 }
  0x4a   : > { %s854_s8 = scalar_lea.hbm %s1214_s16, 128  ;;  %s859_s29 = scalar_lea.hbm %s1440_s1, 512 }
  0x4b   : > { %p1220_p1 = pnand %p1472_p3, %p1182_p2  ;;  %p855_p7 = scmp.ne.s32.totalorder %s1214_s16, %s854_s8 }
  0x4c   : > { %p860_p11 = scmp.lt.u32.totalorder %s1214_s16, %s1440_s1  ;;  %p861_p2 = scmp.lt.u32.totalorder %s859_s29, %s854_s8 }
  0x4d   : > { %p856_p8 = pneg %p1220_p1  ;;  %p863_p0 = scmp.lt.u32.totalorder %s854_s8, %s1214_s16 }
  0x4e   : > { %p862_p6 = por %p861_p2, %p860_p11 }
  0x4f   : > { %p857_p12 = pnand %p856_p8, %p855_p7 }
  0x50   : > { %p864_p10 = por %p863_p0, %p862_p6 }
  0x51   : > { %p858_p13 = pneg %p857_p12 }
  0x53   : > { %p865_p5 = pnand %p864_p10, %p858_p13 }
  0x55   : > { %868 = shalt.err (!%p865_p5)
}
  0x56   : > { %s869_s7 = scalar_lea.vmem %s1209_s12, 128  ;;  %s1013_s3 = smov [#allocation7]  }
  0x57   : > { %p870_p3 = scmp.ne.s32.totalorder %s1209_s12, %s869_s7  ;;  %s874_s4 = sshll.u32 %s1013_s3, 4  ;;  %s875_s4 = int_to_ptr.vmem [resolvable:$false] %s874_s4 }
  0x58   : > { %s876_s20 = scalar_lea.vmem %s875_s4, 256  ;;  %p877_p4 = scmp.lt.s32.totalorder %s1209_s12, %s875_s4 }
  0x59   : > { %p872_p7 = pnand %p870_p3, %p856_p8  ;;  %p878_p11 = scmp.lt.s32.totalorder %s876_s20, %s869_s7 }
  0x5b   : > { %p873_p12 = pneg %p872_p7  ;;  %p879_p2 = por %p878_p11, %p877_p4 }
  0x5d   : > { %p880_p6 = pnand %p879_p2, %p873_p12 }
  0x5f   : > { %883 = shalt.err (!%p880_p6)
}
  0x60   : > { %719 = dma.hbm_to_vmem [thread:$0]  (!%p1220_p1), %s1214_s16, 128, %s1209_s12, %s149_s26  }
  0x61   : > { %170 = sbr.rel (%p1166_p9) target bundleno = 1725 (0x6bd), region = 28  ;;  %s1252_s21 = sand.u32 (!%p1166_p9), 1, %s986_s13  }
  0x62   : > { %s173_s23 = scalar_lea.sflag (!%p1166_p9), [#allocation5], %s1252_s21  ;;  %s175_s8 = scalar_lea.vmem (!%p1166_p9), [#allocation4], %s1252_s21 }
  0x63   : > { %p1474_p8 = scmp.ne.s32.totalorder (!%p1166_p9), %s1458_s24, 0 }
  0x68   : > { %957 = dma.done.wait (%p1474_p8), %s173_s23, 16  }
  0x69   : > { %959 = vsyncadd (%p1474_p8), %s173_s23, 4294967280  ;;  %s180_s22 = sand.u32 1, %s974_s10   ;;  %p1475_p9 = scmp.ne.s32.totalorder %s1471_s27, 0 }
  0x6a   : > { %s682_s12 = sshll.u32 %s180_s22, 3  ;;  %s181_s16 = scalar_lea.sflag [#allocation8], %s180_s22 }
  0x6b   : > { %s184_s6 = scalar_lea.vmem [#allocation7], %s682_s12 }
  0x6c   : > { %961 = dma.done.wait (%p1475_p9), %s181_s16, 128  }
  0x6d   : > { %963 = vsyncadd (%p1475_p9), %s181_s16, 4294967168  ;;  %s207_s26 = scalar_lea.vmem [#allocation9], %s1252_s21  ;;  %p683_p4 = scmp.ne.s32.totalorder %s994_s15, 0 }
  0x6e   : > { %vm212_vm0 = vcmask (!%p683_p4), 16384   ;;  %v1014_v0 = vmov (!%p683_p4), -inf   ;;  %v1015_v1 = vmov (!%p683_p4), 0  }
  0x6f   : > { %211 = sbr.rel (%p683_p4) target bundleno = 118 (0x76), region = 40  ;;  %213 = vst.msk [vmem:[#allocation2] sm:$0x1] (!%p683_p4), %vm212_vm0, %v1014_v0  ;;  %214 = vst.msk [vmem:[#allocation3] sm:$0x1] (!%p683_p4), %vm212_vm0, %v1015_v1 }
  0x76 PF: > { %v1267_v2 = vld [vmem:[#allocation2] sm:$0x1]  ;;  %vm392_vm1 = vcmask 16384   ;;  %v216_v3 = vld [vmem:[%s184_s6] sm:$0xff]  ;;  %vm217_vm2 = vcmask 261120   ;;  %v1016_v5 = vmov 0.0   ;;  %v384_v25 = vlaneseq }
  0x77   : > { %v393_v4 = vsel %vm392_vm1, %v1267_v2, -inf  ;;  %702 = vmatprep.subr.mxu1 %v1016_v5  ;;  %v294_v6 = vmul.f32 %v216_v3, %v216_v3  ;;  %697 = vmatprep.subr.mxu0 %v1016_v5  ;;  %vm1017_vm3 = vmmov 0   ;;  %v215_v7 = vld [vmem:[%s175_s8] sm:$0x1]  ;;  %v1018_v8 = vmov 1.0   ;;  %s688_s24 = sshll.u32 %s994_s15, 3 }
  0x78   : > { %394 = vmax.xlane.f32.xlu0 %v393_v4  ;;  %704 = vmatprep.mubr.msk.f32.mxu1 %vm1017_vm3, %v1016_v5  ;;  %v1273_v9 = vld [vmem:[#allocation3] sm:$0x1]  ;;  %v1282_v26 = vand.u32 127, %v384_v25  ;;  %v386_v27 = vstv %s688_s24  ;;  %vm413_vm9 = vcmask 57344   ;;  %p689_p1 = scmp.ne.s32.totalorder %s994_s15, 1 }
  0x79   : > { %703 = vmatpush3.xpose.msk.msra.mxu1 %vm217_vm2, %v294_v6  ;;  %698 = vmatpush3.xpose.msk.msra.mxu0 %vm217_vm2, %v216_v3 }
  0x7a   : > { %699 = vmatprep.mubr.msk.f32.mxu0 %vm1017_vm3, %v1016_v5  ;;  %v1285_v28 = vadd.s32 %v386_v27, %v1282_v26  ;;  %vm1019_vm3 = vmmov 1  }
  0x7c   : > { %705 = vmatmul.mubr.msk.f32.vlgmr.msra.gmra.mrb[0].mxu1 %vm217_vm2, %v1018_v8  ;;  %700 = vmatmul.mubr.msk.f32.vlgmr.msra.gmra.mrb[0].mxu0 %vm217_vm2, %v215_v7  ;;  %vm388_vm7 = vcmp.lt.s32.totalorder %v1285_v28, 16 }
 0x105   : > { %v1275_v10 = vpop.xlane.xlu0 %394 }
 0x106   : > { %vm396_vm4 = vcmp.eq.f32.partialorder %v1267_v2, %v1275_v10 }
 0x107   : > { %v397_v11 = vsel %vm396_vm4, %v1273_v9, 1073741824 }
 0x108   : > { %v398_v12 = vsel %vm392_vm1, %v397_v11, 2147483647 }
 0x109   : > { %v400_v13 = vshra.s32 %v398_v12, 16  ;;  %v399_v34 = vand.u32 65535, %v398_v12 }
 0x10b   : > { %v402_v14 = vcvt.s32.f32 %v400_v13  ;;  %v401_v35 = vcvt.s32.f32 %v399_v34 }
 0x10d   : > { %403 = vmin.xlane.f32.xlu1 %v402_v14 }
 0x14f   : > { %v367_v15 = vpop.f32.mrb[0].mxu1  ;;  %v290_v16 = vpop.f32.mrb[0].mxu0 }
 0x150   : > { %820 = vrsqrt.f32 %v367_v15  ;;  %v706_v17 = vpop.f32.mrb[1].mxu1  ;;  %v701_v18 = vpop.f32.mrb[1].mxu0  ;;  %vm373_vm5 = vcmp.eq.f32.partialorder %v367_v15, inf  ;;  %v376_v21 = vand.u32 2147483648, %v367_v15  ;;  %vm375_vm6 = vcmp.eq.f32.partialorder %v367_v15, 0.0 }
 0x15a   : > { %v821_v19 = vpop.eup %820 }
 0x15b   : > { %v372_v20 = vmul.f32 %v821_v19, %v367_v15 }
 0x15d   : > { %v374_v22 = vsel %vm373_vm5, %v367_v15, %v372_v20 }
 0x15e   : > { %v377_v23 = vsel %vm375_vm6, %v376_v21, %v374_v22 }
 0x15f   : > { %v378_v24 = vmax.f32 %v377_v23, 1e-08 }
 0x161   : > { %822 = vrcp.f32 %v378_v24 }
 0x16b   : > { %v823_v29 = vpop.eup %822 }
 0x16c   : > { %v380_v30 = vmul.f32 %v823_v29, %v290_v16 }
 0x16e   : > { %vm381_vm8 = vcmp.ne.f32.partialorder %v380_v30, %v380_v30 }
 0x16f   : > { %v382_v31 = vsel %vm381_vm8, -1.1, %v380_v30 }
 0x170   : > { %v389_v32 = vsel %vm388_vm7, %v382_v31, -inf }
 0x171   : > { %v414_v33 = vsel %vm413_vm9, %v389_v32, -inf }
 0x172   : > { %415 = vmax.xlane.f32.xlu0 %v414_v33 }
 0x19a   : > { %v404_v36 = vpop.xlane.xlu1 %403 }
 0x19b   : > { %vm405_vm10 = vcmp.eq.f32.partialorder %v402_v14, %v404_v36  ;;  %v410_v43 = vcvt.f32.s32 %v404_v36 }
 0x19c   : > { %v406_v37 = vsel %vm405_vm10, %v401_v35, inf }
 0x19d   : > { %407 = vmin.xlane.f32.xlu0 %v406_v37  ;;  %v411_v44 = vshll.u32 %v410_v43, 16 }
 0x1ff   : > { %v1289_v38 = vpop.xlane.xlu0 %415 }
 0x200   : > { %vm417_vm11 = vcmp.eq.f32.partialorder %v389_v32, %v1289_v38  ;;  %vm434_vm12 = vcmp.ge.f32.partialorder %v1275_v10, %v1289_v38 }
 0x201   : > { %v418_v39 = vsel %vm417_vm11, %v1285_v28, 1073741824  ;;  %vm445_vm4 = vmxor %vm434_vm12, %vm1019_vm3 }
 0x202   : > { %v419_v40 = vsel %vm413_vm9, %v418_v39, 2147483647 }
 0x203   : > { %v421_v41 = vshra.s32 %v419_v40, 16  ;;  %v420_v50 = vand.u32 65535, %v419_v40 }
 0x205   : > { %v423_v42 = vcvt.s32.f32 %v421_v41  ;;  %v422_v52 = vcvt.s32.f32 %v420_v50 }
 0x207   : > { %424 = vmin.xlane.f32.xlu1 %v423_v42 }
 0x22a   : > { %v408_v45 = vpop.xlane.xlu0 %407 }
 0x22b   : > { %v409_v46 = vcvt.f32.s32 %v408_v45 }
 0x22d   : > { %v1294_v47 = vadd.s32 %v411_v44, %v409_v46  ;;  %v435_v46 = vsel %vm434_vm12, %v1275_v10, %v1289_v38 }
 0x22f   : > { %vm440_vm13 = vcmp.eq.s32.totalorder %v1273_v9, %v1294_v47 }
 0x230   : > { %vm443_vm14 = vmand %vm434_vm12, %vm440_vm13 }
 0x231   : > { %v444_v48 = vsel %vm443_vm14, -inf, %v1267_v2 }
 0x232   : > { %v451_v49 = vsel %vm392_vm1, %v444_v48, -inf }
 0x233   : > { %452 = vmax.xlane.f32.xlu0 %v451_v49 }
 0x294   : > { %v425_v51 = vpop.xlane.xlu1 %424 }
 0x295   : > { %vm426_vm15 = vcmp.eq.f32.partialorder %v423_v42, %v425_v51  ;;  %v431_v59 = vcvt.f32.s32 %v425_v51 }
 0x296   : > { %v427_v53 = vsel %vm426_vm15, %v422_v52, inf  ;;  %vm437_vm15 = vcmp.eq.s32.totalorder %v1282_v26, 0 }
 0x297   : > { %428 = vmin.xlane.f32.xlu1 %v427_v53  ;;  %v432_v61 = vshll.u32 %v431_v59, 16  ;;  %v438_v49 = vsel %vm437_vm15, %v435_v46, -inf }
 0x2c0   : > { %v1305_v54 = vpop.xlane.xlu0 %452 }
 0x2c1   : > { %vm454_vm0 = vcmp.eq.f32.partialorder %v444_v48, %v1305_v54 }
 0x2c2   : > { %v455_v55 = vsel %vm454_vm0, %v1273_v9, 1073741824  ;;  %vm494_vm0 = vcmp.eq.s32.totalorder %v1282_v26, 1 }
 0x2c3   : > { %v456_v56 = vsel %vm392_vm1, %v455_v55, 2147483647 }
 0x2c4   : > { %v458_v57 = vshra.s32 %v456_v56, 16  ;;  %v457_v2 = vand.u32 65535, %v456_v56 }
 0x2c6   : > { %v460_v58 = vcvt.s32.f32 %v458_v57  ;;  %v459_v4 = vcvt.s32.f32 %v457_v2 }
 0x2c8   : > { %461 = vmin.xlane.f32.xlu0 %v460_v58 }
 0x324   : > { %v429_v60 = vpop.xlane.xlu1 %428 }
 0x325   : > { %v430_v62 = vcvt.f32.s32 %v429_v60 }
 0x327   : > { %v433_v63 = vadd.s32 %v432_v61, %v430_v62 }
 0x329   : > { %vm446_vm2 = vcmp.eq.s32.totalorder %v1285_v28, %v433_v63  ;;  %v436_v35 = vsel %vm434_vm12, %v1294_v47, %v433_v63 }
 0x32a   : > { %vm449_vm5 = vmand %vm445_vm4, %vm446_vm2 }
 0x32b   : > { %v450_v0 = vsel %vm449_vm5, -inf, %v389_v32 }
 0x32c   : > { %v471_v1 = vsel %vm413_vm9, %v450_v0, -inf }
 0x32d   : > { %472 = vmax.xlane.f32.xlu1 %v471_v1 }
 0x355   : > { %v462_v3 = vpop.xlane.xlu0 %461 }
 0x356   : > { %vm463_vm6 = vcmp.eq.f32.partialorder %v460_v58, %v462_v3  ;;  %v468_v13 = vcvt.f32.s32 %v462_v3 }
 0x357   : > { %v464_v5 = vsel %vm463_vm6, %v459_v4, inf }
 0x358   : > { %465 = vmin.xlane.f32.xlu0 %v464_v5  ;;  %v469_v15 = vshll.u32 %v468_v13, 16 }
 0x3ba   : > { %v473_v6 = vpop.xlane.xlu1 %472 }
 0x3bb   : > { %vm474_vm7 = vcmp.eq.f32.partialorder %v450_v0, %v473_v6  ;;  %vm491_vm8 = vcmp.ge.f32.partialorder %v1305_v54, %v473_v6 }
 0x3bc   : > { %v475_v7 = vsel %vm474_vm7, %v1285_v28, 1073741824  ;;  %vm502_vm2 = vmxor %vm491_vm8, %vm1019_vm3  ;;  %v492_v47 = vsel %vm491_vm8, %v1305_v54, %v473_v6  ;;  %vm551_vm3 = vcmp.eq.s32.totalorder %v1282_v26, 2 }
 0x3bd   : > { %v476_v8 = vsel %vm413_vm9, %v475_v7, 2147483647  ;;  %v495_v50 = vsel %vm494_vm0, %v492_v47, %v438_v49 }
 0x3be   : > { %v478_v11 = vshra.s32 %v476_v8, 16  ;;  %v477_v20 = vand.u32 65535, %v476_v8 }
 0x3c0   : > { %v480_v12 = vcvt.s32.f32 %v478_v11  ;;  %v479_v22 = vcvt.s32.f32 %v477_v20 }
 0x3c2   : > { %481 = vmin.xlane.f32.xlu1 %v480_v12 }
 0x3e5   : > { %v466_v14 = vpop.xlane.xlu0 %465 }
 0x3e6   : > { %v467_v16 = vcvt.f32.s32 %v466_v14 }
 0x3e8   : > { %v470_v17 = vadd.s32 %v469_v15, %v467_v16 }
 0x3ea   : > { %vm497_vm10 = vcmp.eq.s32.totalorder %v1273_v9, %v470_v17 }
 0x3eb   : > { %vm500_vm11 = vmand %vm491_vm8, %vm497_vm10 }
 0x3ec   : > { %v501_v18 = vsel %vm500_vm11, -inf, %v444_v48 }
 0x3ed   : > { %v508_v19 = vsel %vm392_vm1, %v501_v18, -inf }
 0x3ee   : > { %509 = vmax.xlane.f32.xlu0 %v508_v19 }
 0x44f   : > { %v482_v21 = vpop.xlane.xlu1 %481 }
 0x450   : > { %vm483_vm13 = vcmp.eq.f32.partialorder %v480_v12, %v482_v21  ;;  %v488_v31 = vcvt.f32.s32 %v482_v21 }
 0x451   : > { %v484_v23 = vsel %vm483_vm13, %v479_v22, inf }
 0x452   : > { %485 = vmin.xlane.f32.xlu1 %v484_v23  ;;  %v489_v33 = vshll.u32 %v488_v31, 16 }
 0x47b   : > { %v1323_v24 = vpop.xlane.xlu0 %509 }
 0x47c   : > { %vm511_vm14 = vcmp.eq.f32.partialorder %v501_v18, %v1323_v24 }
 0x47d   : > { %v512_v25 = vsel %vm511_vm14, %v1273_v9, 1073741824  ;;  %v439_v9 = vsel %vm437_vm15, %v436_v35, 0 }
 0x47e   : > { %v513_v27 = vsel %vm392_vm1, %v512_v25, 2147483647 }
 0x47f   : > { %v515_v29 = vshra.s32 %v513_v27, 16  ;;  %v514_v42 = vand.u32 65535, %v513_v27 }
 0x481   : > { %v517_v30 = vcvt.s32.f32 %v515_v29  ;;  %v516_v44 = vcvt.s32.f32 %v514_v42 }
 0x483   : > { %518 = vmin.xlane.f32.xlu0 %v517_v30 }
 0x4df   : > { %v486_v32 = vpop.xlane.xlu1 %485 }
 0x4e0   : > { %v487_v34 = vcvt.f32.s32 %v486_v32 }
 0x4e2   : > { %v490_v36 = vadd.s32 %v489_v33, %v487_v34 }
 0x4e4   : > { %v493_v37 = vsel %vm491_vm8, %v470_v17, %v490_v36  ;;  %vm503_vm4 = vcmp.eq.s32.totalorder %v1285_v28, %v490_v36 }
 0x4e5   : > { %v496_v39 = vsel %vm494_vm0, %v493_v37, %v439_v9  ;;  %vm506_vm5 = vmand %vm502_vm2, %vm503_vm4 }
 0x4e6   : > { %v507_v40 = vsel %vm506_vm5, -inf, %v450_v0 }
 0x4e7   : > { %v528_v41 = vsel %vm413_vm9, %v507_v40, -inf }
 0x4e8   : > { %529 = vmax.xlane.f32.xlu1 %v528_v41 }
 0x510   : > { %v519_v43 = vpop.xlane.xlu0 %518 }
 0x511   : > { %vm520_vm6 = vcmp.eq.f32.partialorder %v517_v30, %v519_v43  ;;  %v525_v60 = vcvt.f32.s32 %v519_v43 }
 0x512   : > { %v521_v45 = vsel %vm520_vm6, %v516_v44, inf }
 0x513   : > { %522 = vmin.xlane.f32.xlu0 %v521_v45  ;;  %v526_v63 = vshll.u32 %v525_v60, 16 }
 0x575   : > { %v530_v48 = vpop.xlane.xlu1 %529 }
 0x576   : > { %vm531_vm7 = vcmp.eq.f32.partialorder %v507_v40, %v530_v48  ;;  %vm548_vm10 = vcmp.ge.f32.partialorder %v1323_v24, %v530_v48 }
 0x577   : > { %v549_v10 = vsel %vm548_vm10, %v1323_v24, %v530_v48  ;;  %v532_v38 = vsel %vm531_vm7, %v1285_v28, 1073741824 }
 0x578   : > { %v552_v51 = vsel %vm551_vm3, %v549_v10, %v495_v50  ;;  %v533_v52 = vsel %vm413_vm9, %v532_v38, 2147483647 }
 0x579   : > { %554 = vst.msk [vmem:[#allocation2] sm:$0x1] %vm392_vm1, %v552_v51  ;;  %v535_v53 = vshra.s32 %v533_v52, 16  ;;  %v534_v55 = vand.u32 65535, %v533_v52 }
 0x57b   : > { %v537_v54 = vcvt.s32.f32 %v535_v53  ;;  %v536_v57 = vcvt.s32.f32 %v534_v55 }
 0x57d   : > { %538 = vmin.xlane.f32.xlu1 %v537_v54 }
 0x5a0   : > { %v523_v59 = vpop.xlane.xlu0 %522 }
 0x5a1   : > { %v524_v28 = vcvt.f32.s32 %v523_v59 }
 0x5a3   : > { %v527_v2 = vadd.s32 %v526_v63, %v524_v28 }
 0x60a   : > { %v539_v56 = vpop.xlane.xlu1 %538 }
 0x60b   : > { %vm540_vm12 = vcmp.eq.f32.partialorder %v537_v54, %v539_v56  ;;  %v545_v61 = vcvt.f32.s32 %v539_v56 }
 0x60c   : > { %v541_v58 = vsel %vm540_vm12, %v536_v57, inf }
 0x60d   : > { %542 = vmin.xlane.f32.xlu1 %v541_v58  ;;  %v546_v0 = vshll.u32 %v545_v61, 16 }
 0x69a   : > { %v543_v62 = vpop.xlane.xlu1 %542 }
 0x69b   : > { %v544_v1 = vcvt.f32.s32 %v543_v62  ;;  %559 = sbr.rel (%p689_p1) target bundleno = 1698 (0x6a2), region = 44 }
 0x69d   : > { %v547_v3 = vadd.s32 %v546_v0, %v544_v1 }
 0x69f   : > { %v550_v4 = vsel %vm548_vm10, %v527_v2, %v547_v3 }
 0x6a0   : > { %v553_v5 = vsel %vm551_vm3, %v550_v4, %v496_v39 }
 0x6a1   : > { %555 = vst.msk [vmem:[#allocation3] sm:$0x1] %vm392_vm1, %v553_v5  ;;  %560 = vst.msk [vmem:[%s207_s26] sm:$0x1] (!%p689_p1), %vm392_vm1, %v553_v5 }
 0x6a2 PF: > { %s1476_s27 = sld [smem:[#allocation14_spill]]  ;;  %s1477_s2 = sld [smem:[#allocation15_spill]] }
 0x6a3   : > { %s1478_s5 = sld [smem:[#allocation19_spill]]  ;;  %s574_s3 = sshll.u32 %s207_s26, 4  ;;  %s575_s3 = int_to_ptr.vmem [resolvable:$true] %s574_s3 }
 0x6a4   : > { %s562_s15 = scalar_lea.sflag [#allocation6], %s1252_s21  ;;  %s884_s4 = scalar_lea.vmem %s575_s3, 16 }
 0x6a5   : > { %p885_p13 = scmp.ne.s32.totalorder %s575_s3, %s884_s4  ;;  %s1020_s20 = smov [#allocation9]  }
 0x6a6   : > { %s888_s23 = sshll.u32 %s1020_s20, 4  ;;  %s889_s23 = int_to_ptr.vmem [resolvable:$false] %s888_s23 }
 0x6a7   : > { %s890_s8 = scalar_lea.vmem %s889_s23, 32  ;;  %p891_p3 = scmp.lt.s32.totalorder %s575_s3, %s889_s23 }
 0x6a8   : > { %s690_s25 = sshll.u32 %s1476_s27, 4  ;;  %p1479_p0 = scmp.ne.s32.totalorder %s1477_s2, 0 }
 0x6a9   : > { %s1380_s7 = scalar_lea.hbm %s1478_s5, %s690_s25  ;;  %p892_p7 = scmp.lt.s32.totalorder %s890_s8, %s884_s4 }
 0x6aa   : > { %p886_p10 = pnand %p885_p13, %p1479_p0 }
 0x6ab   : > { %p893_p12 = por %p892_p7, %p891_p3 }
 0x6ac   : > { %p887_p5 = pneg %p886_p10 }
 0x6ae   : > { %p894_p11 = pnand %p893_p12, %p887_p5 }
 0x6b0   : > { %897 = shalt.err (!%p894_p11)
}
 0x6b1   : > { %s898_s21 = scalar_lea.hbm %s1380_s7, 16  ;;  %s902_s16 = scalar_lea.hbm %s1478_s5, 32 }
 0x6b2   : > { %p899_p2 = scmp.ne.s32.totalorder %s1380_s7, %s898_s21  ;;  %p903_p9 = scmp.lt.u32.totalorder %s1380_s7, %s1478_s5 }
 0x6b3   : > { %p904_p4 = scmp.lt.u32.totalorder %s902_s16, %s898_s21  ;;  %p906_p13 = scmp.lt.u32.totalorder %s898_s21, %s1380_s7 }
 0x6b4   : > { %p900_p6 = pnand %p899_p2, %p1479_p0 }
 0x6b5   : > { %p905_p1 = por %p904_p4, %p903_p9 }
 0x6b6   : > { %p901_p8 = pneg %p900_p6 }
 0x6b7   : > { %p907_p10 = por %p906_p13, %p905_p1 }
 0x6b9   : > { %p908_p5 = pnand %p907_p10, %p901_p8 }
 0x6bb   : > { %911 = shalt.err (!%p908_p5)
}
 0x6bc   : > { %711 = dma.vmem_to_hbm [thread:$0]  (%p1479_p0), %s575_s3, 16, %s1380_s7, %s562_s15  }
 0x6bd PF: > { %s1480_s24 = sld [smem:[#allocation13_spill]]  ;;  %s1481_s27 = sld [smem:[#allocation16_spill]] }
 0x6be   : > { %p725_p3 = scmp.ge.s32.totalorder %s1010_s19, 2 }
 0x6c3   : > { %s586_s25 = sand.u32 1, %s1480_s24   ;;  %p1482_p7 = scmp.ne.s32.totalorder %s1481_s27, 0 }
 0x6c4   : > { %s587_s29 = scalar_lea.sflag [#allocation6], %s586_s25 }
 0x6c5   : > { %p721_p12 = pnand %p725_p3, %p1482_p7 }
 0x6c7   : > { %965 = dma.done.wait (!%p721_p12), %s587_s29, 16  }
 0x6c8   : > { %967 = vsyncadd (!%p721_p12), %s587_s29, 4294967280  ;;  %s21_s19 = sadd.s32 1, %s1010_s19   ;;  %s1483_s30 = smov %s1206_s9 }
 0x6c9   : > { %p18_p11 = scmp.ge.s32.totalorder %s21_s19, 6   ;;  %s1484_s2 = sld [smem:[#allocation17_spill]] }
 0x6ca   : > { %s1485_s9 = smov %s974_s10  ;;  %s1486_s10 = smov %s978_s11 }
 0x6cb   : > { %s1487_s11 = smov %s1483_s30  ;;  %s1488_s12 = smov %s986_s13 }
 0x6cc   : > { %s1489_s13 = smov %s990_s14  ;;  %s1490_s14 = smov %s1203_s0 }
 0x6cd   : > { %s1491_s15 = smov %s1002_s17  ;;  %s1492_s16 = smov %s1006_s18 }
 0x6ce   : > { %s1494_s18 = smov %s1500_s28  ;;  %20 = sbr.rel (!%p18_p11) target bundleno = 14 (0xe), region = 94 }
 0x6cf   : > { %s1493_s17 = smov %s1484_s2 }
 0x6d5   :  { %591 = vsyncpa [#allocation5], 1 }
 0x6d6   :  { %593 = vsyncpa [#allocation5 + $0x1], 1 }
 0x6d7   :  { %594 = vsyncpa [#allocation8], 1 }
 0x6d8   :  { %596 = vsyncpa [#allocation8 + $0x1], 1 }
 0x6d9   :  { %597 = vsyncpa [#allocation6], 1 }
 0x6da   :  { %599 = vsyncpa [#allocation6 + $0x1], 1 }

</bundles_post_ra>
